<compile_context>
chip_gen: v5e
topology: v5e:2x2
jax: 0.10.0
libtpu: 0.0.40
codegen_flags: <defaults>
</compile_context>

<pallas_src>
import math

import jax
import jax.numpy as jnp
import numpy as np
from jax.experimental import pallas as pl
from jax.experimental.pallas import tpu as pltpu


# ----------------------------------------------------------------------------
# Config (mirrors cfg.sampling.* from the PyTorch module)
# ----------------------------------------------------------------------------
MAX_NUM_FRAMES = 16          # cfg.sampling.max_num_frames
NUM_FRAMES_PER_VIDEO = 3     # cfg.sampling.num_frames_per_video (>1)
SAMPLING_TYPE = "random"     # anything != 'uniform' -> use all F-1 diffs
SKIP_SMALL_T_FREQS = 0
EMBED_DIM = 256              # self.d
DEFAULT_TILE_N = 4096        # rows per grid step (HBM-write-bound sweet spot)


def _round_up(x: int, m: int) -> int:
    return ((x + m - 1) // m) * m


def construct_log_spaced_freqs(max_num_frames: int,
                               skip_small_t_freqs: int = 0) -> np.ndarray:
    """Same math as the PyTorch helper; returns [1, num_fourier_feats] f32."""
    time_resolution = 2 ** np.ceil(np.log2(max_num_frames))
    num_fourier_feats = int(np.ceil(np.log2(time_resolution)))
    powers = (2.0 ** np.arange(num_fourier_feats)).astype(np.float64)
    powers = powers[: len(powers) - skip_small_t_freqs]
    fourier_coefs = powers[None, :] * math.pi / time_resolution
    return fourier_coefs.astype(np.float32)


# ----------------------------------------------------------------------------
# Pallas kernel: gather rows of the fused [16, 272] table with a lane-dense
# one-hot [16, TILE_N] and a single transposed-LHS MXU matmul.
# No captured array constants (only Refs, iota and Python scalars).
# ----------------------------------------------------------------------------
def _tde_gather_kernel(tdiff_ref, table_ref, out_ref):
    # tdiff_ref : [1, TILE_N]          f32  (lane-major frame-index diffs)
    # table_ref : [16, 272]            f32  (embed | sin(c*k) | cos(c*k)),
    #                                        VMEM-resident across all steps
    # out_ref   : [TILE_N, 272]        f32
    t = tdiff_ref[...]                                           # [1, TILE_N]
    m = table_ref.shape[0]
    tn = t.shape[1]

    # const_embs = table[round(t)]  ==  one_hot(idx).T @ table on the MXU.
    # Clamp for parity with the JAX-gather reference (PyTorch nn.Embedding
    # would raise on out-of-range indices; we clamp instead).
    idx = jnp.clip(jnp.round(t).astype(jnp.int32), 0, m - 1)     # [1, TILE_N]
    rows = jax.lax.broadcasted_iota(jnp.int32, (m, tn), 0)       # [16, TILE_N]
    onehot = (rows == idx).astype(jnp.float32)                   # lane-dense

    # Contract dim 0 of both operands: onehot.T @ table -> [TILE_N, 272].
    out_ref[...] = jax.lax.dot_general(
        onehot, table_ref[...],
        dimension_numbers=(((0,), (0,)), ((), ())),
        preferred_element_type=jnp.float32)


# ----------------------------------------------------------------------------
# Wrapper (glue: diff computation, fused table, tiling, pallas_call, reshape)
# ----------------------------------------------------------------------------
class TemporalDifferenceEncoderPallas:
    def __init__(self, key, tile_n: int = DEFAULT_TILE_N,
                 min_pallas_rows: int = 0, integer_time_diffs: bool = True):
        self.fourier_coefs_np = construct_log_spaced_freqs(
            MAX_NUM_FRAMES, SKIP_SMALL_T_FREQS)
        self.fourier_coefs = jnp.asarray(self.fourier_coefs_np)   # [1, NF]
        self.num_fourier_feats = self.fourier_coefs_np.shape[1]
        self.out_dim = EMBED_DIM + 2 * self.num_fourier_feats     # 272

        # nn.Embedding default init: N(0, 1)
        self.embed_table = jax.random.normal(
            key, (MAX_NUM_FRAMES, EMBED_DIM), dtype=jnp.float32)

        # Fused table [16, 272] = [embed | sin(c*k) | cos(c*k)], k = 0..15.
        # Exact fold of the FixedTimeEncoder *only* for integer t_diffs.
        k = jnp.arange(MAX_NUM_FRAMES, dtype=jnp.float32)[:, None]   # [16, 1]
        raw = k * self.fourier_coefs                                  # [16, NF]
        self.fused_table = jnp.concatenate(
            [self.embed_table, jnp.sin(raw), jnp.cos(raw)], axis=1)

        # Multi-step tiles must be a multiple of 128 (lane-major input block).
        self.tile_n = max(128, _round_up(int(tile_n), 128))
        # Production callers should set min_pallas_rows ~ 1024 (tiny N is pure
        # launch overhead); default 0 so the Pallas path is exercised here.
        self.min_pallas_rows = min_pallas_rows
        # If t_diffs can be fractional, the folded table is not exact; fall
        # back to the faithful fused-XLA path in that case.
        self.integer_time_diffs = integer_time_diffs

    def get_dim(self) -> int:
        per_diff = self.out_dim
        if NUM_FRAMES_PER_VIDEO == 1:
            return 1
        if SAMPLING_TYPE == "uniform":
            return per_diff
        return per_diff * (NUM_FRAMES_PER_VIDEO - 1)

    # ---- shared diff computation --------------------------------------------
    @staticmethod
    def _t_diffs(t: jnp.ndarray) -> jnp.ndarray:
        if SAMPLING_TYPE == "uniform":
            return (t[:, 1] - t[:, 0]).reshape(-1)
        return (t[:, 1:] - t[:, :-1]).reshape(-1)

    def _embed_from_diffs_jax(self, t_diffs: jnp.ndarray) -> jnp.ndarray:
        idx = jnp.round(t_diffs).astype(jnp.int32)
        const_embs = self.embed_table[idx]                        # [N, 256]
        raw = t_diffs[:, None] * self.fourier_coefs               # [N, NF]
        return jnp.concatenate(
            [const_embs, jnp.sin(raw), jnp.cos(raw)], axis=1)

    # ---- forward -------------------------------------------------------------
    def __call__(self, t: jnp.ndarray) -> jnp.ndarray:
        assert t.ndim == 2 and t.shape[1] == NUM_FRAMES_PER_VIDEO
        batch_size = t.shape[0]
        t = t.astype(jnp.float32)

        if NUM_FRAMES_PER_VIDEO == 1:
            return jnp.zeros((batch_size, 1), dtype=jnp.float32)

        t_diffs = self._t_diffs(t)                                # [N]
        n = t_diffs.shape[0]

        if (not self.integer_time_diffs) or n < self.min_pallas_rows:
            # TODO(synk): fractional timestamps need the unrounded Fourier
            # features computed in-kernel; the folded table is exact only for
            # integer frame-index diffs, so use the faithful fused-XLA path.
            return self._embed_from_diffs_jax(t_diffs).reshape(batch_size, -1)

        # --- tiling: big tiles, but >= 2 grid steps when there is enough work
        # so both v7x TensorCores get row tiles via the "parallel" axis.
        if n >= 256:
            tile_n = min(self.tile_n, _round_up(pl.cdiv(n, 2), 128))
        else:
            tile_n = _round_up(n, 8)          # single step, full-dim block
        n_pad = _round_up(n, tile_n)
        grid = n_pad // tile_n

        # Lane-major diffs: (1, n_pad) costs ~8*4*tile_n B of VMEM per buffer
        # instead of the 128x lane-padded (tile_n, 1) column.
        td = t_diffs.reshape(1, n)
        if n_pad != n:
            td = jnp.pad(td, ((0, 0), (0, n_pad - n)))

        out = pl.pallas_call(
            _tde_gather_kernel,
            # Exact row count: the ragged last block is a masked partial store,
            # so no post-kernel out[:n] slice (and no extra HBM pass).
            out_shape=jax.ShapeDtypeStruct((n, self.out_dim), jnp.float32),
            grid=(grid,),
            in_specs=[
                # row of diffs, lane-major tile
                pl.BlockSpec((1, tile_n), lambda i: (0, i)),
                # fused table: full array, VMEM-resident across all steps
                pl.BlockSpec((MAX_NUM_FRAMES, self.out_dim), lambda i: (0, 0)),
            ],
            out_specs=pl.BlockSpec((tile_n, self.out_dim), lambda i: (i, 0)),
            compiler_params=pltpu.CompilerParams(
                dimension_semantics=("parallel",),
                # 2 x (4096 x 384 lanes x 4 B) output buffers ~= 12.6 MB plus
                # inputs; raise above v5e's 16 MiB scoped default.
                vmem_limit_bytes=32 * 1024 * 1024),
        )(td, self.fused_table)

        # out.view(B, num_diffs, -1).view(B, -1)
        return out.reshape(batch_size, -1)

    # Pure-JAX reference for correctness checking (faithful to the module).
    def reference(self, t: jnp.ndarray) -> jnp.ndarray:
        t = t.astype(jnp.float32)
        batch_size = t.shape[0]
        if NUM_FRAMES_PER_VIDEO == 1:
            return jnp.zeros((batch_size, 1), dtype=jnp.float32)
        t_diffs = self._t_diffs(t)
        return self._embed_from_diffs_jax(t_diffs).reshape(batch_size, -1)


if __name__ == "__main__":
    key = jax.random.PRNGKey(0)
    k_embed, k_t1, k_t2 = jax.random.split(key, 3)

    # --- Case 1: small batch, single grid step (N = 8 diff rows) --------------
    enc = TemporalDifferenceEncoderPallas(k_embed)
    B = 4
    t_raw = jax.random.randint(
        k_t1, (B, NUM_FRAMES_PER_VIDEO), 0, MAX_NUM_FRAMES, dtype=jnp.int32)
    t = jnp.sort(t_raw, axis=1)    # sorted so diffs are valid embedding indices

    out = jax.block_until_ready(enc(t))
    ref = enc.reference(t)
    assert out.shape == (B, enc.get_dim()), (out.shape, enc.get_dim())
    np.testing.assert_allclose(np.asarray(out), np.asarray(ref),
                               rtol=1e-5, atol=1e-5)

    # --- Case 2: forced 128-row tile -> 3 grid steps, ragged (masked) last ----
    enc2 = TemporalDifferenceEncoderPallas(k_embed, tile_n=128)
    B2 = 160   # N = 320 diff rows -> tiles of 128 -> grid (3,), last block partial
    t_raw2 = jax.random.randint(
        k_t2, (B2, NUM_FRAMES_PER_VIDEO), 0, MAX_NUM_FRAMES, dtype=jnp.int32)
    t2 = jnp.sort(t_raw2, axis=1)

    out2 = jax.block_until_ready(enc2(t2))
    ref2 = enc2.reference(t2)
    assert out2.shape == (B2, enc2.get_dim())
    np.testing.assert_allclose(np.asarray(out2), np.asarray(ref2),
                               rtol=1e-5, atol=1e-5)

    # --- Case 3: fractional-timestamp fallback path (pure XLA, exact) ---------
    enc3 = TemporalDifferenceEncoderPallas(k_embed, integer_time_diffs=False)
    out3 = jax.block_until_ready(enc3(t))
    np.testing.assert_allclose(np.asarray(out3), np.asarray(ref),
                               rtol=1e-5, atol=1e-5)

    print("KERNEL_OK")
</pallas_src>

<mosaic_0001>
module attributes {stable_mosaic.version = 11 : i64} {
  func.func @_tde_gather_kernel(%arg0: i32, %arg1: memref<1x8xf32, #tpu.memory_space<vmem>>, %arg2: memref<16x264xf32, #tpu.memory_space<vmem>>, %arg3: memref<8x264xf32, #tpu.memory_space<vmem>>) attributes {dimension_semantics = [#tpu.dimension_semantics<parallel>], iteration_bounds = array<i64: 1>, scalar_prefetch = 0 : i64, scratch_operands = 0 : i64, tpu.core_type = #tpu.core_type<tc>, window_params = [{transform_indices = @transform_0, window_bounds = array<i64: 1, 8>}, {pipeline_mode = #tpu.pipeline_mode<synchronous>, transform_indices = @transform_1, window_bounds = array<i64: 16, 264>}, {transform_indices = @transform_2, window_bounds = array<i64: 8, 264>}]} {
    %c0 = arith.constant 0 : index
    %c0_0 = arith.constant 0 : index
    %0 = vector.load %arg1[%c0, %c0_0] : memref<1x8xf32, #tpu.memory_space<vmem>>, vector<1x8xf32>
    %1 = math.roundeven %0 : vector<1x8xf32>
    %2 = arith.fptosi %1 : vector<1x8xf32> to vector<1x8xi32>
    %c0_i32 = arith.constant 0 : i32
    %c15_i32 = arith.constant 15 : i32
    %3 = vector.broadcast %c0_i32 : i32 to vector<1x8xi32>
    %4 = arith.maxsi %3, %2 : vector<1x8xi32>
    %5 = vector.broadcast %c15_i32 : i32 to vector<1x8xi32>
    %6 = arith.minsi %5, %4 : vector<1x8xi32>
    %7 = tpu.iota {dimensions = array<i32: 0>} : vector<16x8xi32>
    %8 = vector.broadcast %6 : vector<1x8xi32> to vector<16x8xi32>
    %9 = arith.cmpi eq, %7, %8 : vector<16x8xi32>
    %10 = arith.extui %9 : vector<16x8xi1> to vector<16x8xi32>
    %11 = arith.sitofp %10 : vector<16x8xi32> to vector<16x8xf32>
    %c0_1 = arith.constant 0 : index
    %c0_2 = arith.constant 0 : index
    %12 = vector.load %arg2[%c0_1, %c0_2] : memref<16x264xf32, #tpu.memory_space<vmem>>, vector<16x264xf32>
    %cst = arith.constant dense<0.000000e+00> : vector<8x264xf32>
    %13 = tpu.matmul %11, %12, %cst {dimension_numbers = #tpu.dot_dimension_numbers<[0], [0], [1], [1], [0, 1, 1, 1], [], []>} : vector<16x8xf32>, vector<16x264xf32>, vector<8x264xf32> -> vector<8x264xf32>
    %c0_3 = arith.constant 0 : index
    %c0_4 = arith.constant 0 : index
    %14 = vector.load %arg3[%c0_3, %c0_4] : memref<8x264xf32, #tpu.memory_space<vmem>>, vector<8x264xf32>
    tpu.vector_store %arg3[%c0_3, %c0_4], %13 {strides = array<i32>} : memref<8x264xf32, #tpu.memory_space<vmem>>, vector<8x264xf32>,
    return
  }
  func.func @transform_0(%arg0: i32) -> (i32, i32) {
    %c0_i32 = arith.constant 0 : i32
    %c0_i32_0 = arith.constant 0 : i32
    return %c0_i32, %arg0 : i32, i32
  }
  func.func @transform_1(%arg0: i32) -> (i32, i32) {
    %c0_i32 = arith.constant 0 : i32
    %c0_i32_0 = arith.constant 0 : i32
    %c0_i32_1 = arith.constant 0 : i32
    return %c0_i32, %c0_i32_0 : i32, i32
  }
  func.func @transform_2(%arg0: i32) -> (i32, i32) {
    %c0_i32 = arith.constant 0 : i32
    %c0_i32_0 = arith.constant 0 : i32
    return %arg0, %c0_i32 : i32, i32
  }
}

</mosaic_0001>

<bundles_post_ra>
// kernel: tpu_custom_call.1
= control target key start
LH: loop header
LB: loop body
LE: loop exit
PB: predicated region body
PF: predicated region fallthrough
CT: control target
= control target key end

     0   :  { %7 = vsyncpa [#allocation3], 0  ;;  %s304_s0 = inlined_call_operand.hbm [shape: f32[1,8], index: 0, kind: input, shape index: {}]   ;;  %s305_s1 = inlined_call_operand.hbm [shape: f32[16,264], index: 1, kind: input, shape index: {}]   ;;  %s306_s2 = inlined_call_operand.hbm [shape: f32[8,264], index: 2, kind: output, shape index: {}]  }
   0x1   :  { %8 = vsyncpa [#allocation6], 0 }
   0x2   :  { %9 = vsyncpa [#allocation4], 0  ;;  %s15_s11 = sshll.u32 %s304_s0, 4  ;;  %s274_s12 = smov [#allocation2]   ;;  %s16_s11 = int_to_ptr.hbm [resolvable:$true] %s15_s11 }
   0x3   :  { %s17_s13 = sshll.u32 %s274_s12, 4  ;;  %s25_s16 = sshll.u32 %s305_s1, 4  ;;  %s18_s13 = int_to_ptr.vmem [resolvable:$true] %s17_s13  ;;  %s26_s16 = int_to_ptr.hbm [resolvable:$true] %s25_s16 }
   0x4   :  { %20 = dma.hbm_to_vmem [thread:$0]  %s16_s11, 16, %s18_s13, [#allocation3]  }
   0x5   :  { %s275_s17 = smov [#allocation5]   ;;  %s276_s19 = smov 384  }
   0x6   :  { %s27_s18 = sshll.u32 %s275_s17, 4  ;;  %s277_s20 = smov 24   ;;  %s28_s18 = int_to_ptr.vmem [resolvable:$true] %s27_s18 }
   0x7   :  { %33 = dma.hbm_to_vmem [thread:$0]  %s26_s16, 768, %s28_s18, [#allocation6], %s276_s19, %s276_s19, %s277_s20  }
   0x8   :  { %268 = dma.done.wait [#allocation3], 16  }
   0x9   :  { %269 = vsyncadd [#allocation3], 4294967280 }
   0xa   :  { %270 = dma.done.wait [#allocation6], 768  }
   0xb   :  { %271 = vsyncadd [#allocation6], 4294966528  ;;  %v42_v0 = vld [vmem:[#allocation2] sm:$0x1]  ;;  %v62_v2 = vld [vmem:[#allocation5 + $0x20] sm:$0xff]  ;;  %v48_v4 = vlaneseq  ;;  %v278_v14 = vmov 0.0  }
   0xc   :  { %v61_v1 = vld [vmem:[#allocation5 + $0x18] sm:$0xff]  ;;  %v189_v3 = vcvt.f32.s32 %v42_v0  ;;  %134 = vmatpush.msra.mxu1 %v62_v2  ;;  %v63_v5 = vld [vmem:[#allocation5 + $0x28] sm:$0xff]  ;;  %v58_v6 = vld [vmem:[#allocation5] sm:$0xff]  ;;  %vm96_vm4 = vcmask 130048   ;;  %s279_s0 = smov [#allocation7]   ;;  %s171_s23 = sshll.u32 %s306_s2, 4  ;;  %s172_s23 = int_to_ptr.hbm [resolvable:$true] %s171_s23 }
   0xd   :  { %114 = vmatpush.msra.mxu0 %v61_v1  ;;  %v59_v7 = vld [vmem:[#allocation5 + $0x8] sm:$0xff]  ;;  %154 = vmatpush.msra.mxu2 %v63_v5  ;;  %v60_v8 = vld [vmem:[#allocation5 + $0x10] sm:$0xff]  ;;  %v49_v10 = vshrl.u32 %v48_v4, 7  ;;  %s169_s1 = sshll.u32 %s279_s0, 4  ;;  %vm162_vm5 = vcmask 64512   ;;  %s170_s1 = int_to_ptr.vmem [resolvable:$true] %s169_s1 }
   0xe   :  { %vm44_vm0 = vcmp.gt.s32.totalorder %v189_v3, 0  ;;  %135 = vmatpush.msra.mxu1 %v59_v7 }
   0xf   :  { %115 = vmatpush.msra.mxu0 %v58_v6  ;;  %v45_v9 = vsel %vm44_vm0, %v189_v3, 0  ;;  %155 = vmatpush.msra.mxu2 %v60_v8  ;;  %v50_v13 = vadd.s32 8, %v49_v10 }
  0x10   :  { %vm46_vm1 = vcmp.lt.s32.totalorder %v45_v9, 15 }
  0x11   :  { %v47_v11 = vsel %vm46_vm1, %v45_v9, 15 }
  0x12   :  { %v51_v12 = vperm.slane %v47_v11, 0 }
  0x14   :  { %vm52_vm2 = vcmp.eq.s32.totalorder %v49_v10, %v51_v12  ;;  %vm53_vm3 = vcmp.eq.s32.totalorder %v50_v13, %v51_v12 }
  0x15   :  { %v182_v15 = vsel %vm52_vm2, 1.0, %v278_v14  ;;  %v183_v16 = vsel %vm53_vm3, 1.0, %v278_v14 }
  0x16   :  { %64 = vxpose.xlu0.b32.start [1/2] (short) (narrow) %v182_v15, 8 }
  0x1e   :  { %65 = vxpose.xlu0.b32.end [2/2] (short) (narrow) %v183_v16, 8 }
  0xba   :  { %v80_v17 = vpop.trf.xlu0 }
  0xbb   :  { %184 = vmatmul.msk.f32.vlgmr.msra.gmra.mxu0 %vm96_vm4, %v80_v17  ;;  %185 = vmatmul.msk.f32.vlgmr.msra.gmra.mxu1 %vm96_vm4, %v80_v17 }
  0xbc   :  { %186 = vmatmul.msk.f32.vlgmr.msra.gmra.mxu2 %vm96_vm4, %v80_v17 }
 0x138   :  { %v117_v18 = vpop.f32.mrf.mxu0  ;;  %v137_v19 = vpop.f32.mrf.mxu1 }
 0x139   :  { %160 = vst [vmem:[#allocation7] sm:$0xff] %v117_v18 }
 0x13a   :  { %161 = vst [vmem:[#allocation7 + $0x8] sm:$0xff] %v137_v19 }
 0x13f   :  { %v157_v20 = vpop.f32.mrf.mxu2 }
 0x140   :  { %163 = vst.msk [vmem:[#allocation7 + $0x10] sm:$0xff] %vm162_vm5, %v157_v20 }
 0x141   :  { %174 = dma.vmem_to_hbm [thread:$0]  %s170_s1, 384, %s172_s23, [#allocation4]  }
 0x142   :  { %272 = dma.done.wait [#allocation4], 384  }
 0x143   :  { %273 = vsyncadd [#allocation4], 4294966912 }
 0x144   :  { %179 = vsyncpa [#allocation3], 1 }
 0x145   :  { %180 = vsyncpa [#allocation6], 1 }
 0x146   :  { %181 = vsyncpa [#allocation4], 1 }

</bundles_post_ra>
